<compile_context>
chip_gen: v7x
topology: tpu7x:2x2x1
jax: 0.10.0
libtpu: 0.0.40
codegen_flags: <defaults>
</compile_context>

<pallas_src>
import functools

import jax
import jax.numpy as jnp
from jax.experimental import pallas as pl
from jax.experimental.pallas import tpu as pltpu


def _round_up(x, m):
    return (x + m - 1) // m * m


# ----------------------------------------------------------------------------
# Pallas kernel: one (B_TILE * L, C) row-slab per grid step.
# ----------------------------------------------------------------------------
def resblock_kernel(x_ref, w1_ref, b1_ref, w2_ref, b2_ref, w3_ref, b3_ref,
                    o_ref, pad_buf, *, ksize, dilation, seq_len, lead):
    R, cin_p = x_ref.shape                 # R = B_TILE * L rows, cin_p lanes
    L = seq_len
    B = R // L                             # batch elements packed in this step
    cmid_p = w1_ref.shape[1]
    pad = (ksize - 1) // 2 * dilation
    mm_dtype = x_ref.dtype                 # matmul input dtype (f32 or bf16)

    x = x_ref[...]                         # (R, cin_p), mm_dtype

    # --- block 1: 1x1 conv (+folded BN) + ReLU -------------------------------
    # single (R, cin_p) @ (cin_p, cmid_p) MXU matmul; bias/ReLU in f32.
    h1 = jnp.dot(x, w1_ref[...], preferred_element_type=jnp.float32) + b1_ref[...]
    h1 = jnp.maximum(h1, 0.0)              # (R, cmid_p) f32

    # --- block 2: k-tap dilated conv (+folded BN) + ReLU ---------------------
    # Stage h1 (already in matmul dtype) into a per-batch zero-halo scratch so
    # every tap is a static-offset window matmul.  Only the halo rows are
    # zeroed (the interior is fully overwritten below), and the leading halo is
    # rounded up to the 8-sublane granule so the store is aligned.
    if lead > 0:
        halo = jnp.zeros((B, lead, cmid_p), mm_dtype)
        pad_buf[:, pl.ds(0, lead), :] = halo
        pad_buf[:, pl.ds(lead + L, lead), :] = halo
    pad_buf[:, pl.ds(lead, L), :] = h1.astype(mm_dtype).reshape(B, L, cmid_p)

    # taps: accumulate in f32; bias added once after the sum (hoisted).
    acc = jnp.dot(pad_buf[:, pl.ds(lead - pad, L), :].reshape(R, cmid_p),
                  w2_ref[0], preferred_element_type=jnp.float32)
    for t in range(1, ksize):              # static unrolled taps
        win = pad_buf[:, pl.ds(lead - pad + t * dilation, L), :].reshape(R, cmid_p)
        acc = acc + jnp.dot(win, w2_ref[t], preferred_element_type=jnp.float32)
    h2 = jnp.maximum(acc + b2_ref[...], 0.0)          # (R, cmid_p) f32

    # --- block 3: 1x1 conv (+folded BN) + ReLU -------------------------------
    h3 = jnp.dot(h2.astype(mm_dtype), w3_ref[...],
                 preferred_element_type=jnp.float32) + b3_ref[...]
    h3 = jnp.maximum(h3, 0.0)              # (R, cin_p) f32

    # TODO(synk): Dropout is identity in eval mode; training-mode dropout would
    # need pltpu.prng_seed / stateful_bernoulli.
    o_ref[...] = (h3 + x.astype(jnp.float32)).astype(o_ref.dtype)


# ----------------------------------------------------------------------------
# Wrapper: BN folding, channel/batch padding, layout plumbing, pallas_call.
# ----------------------------------------------------------------------------
def fold_bn(w, b, gamma, beta, mean, var, eps=1e-5):
    # w: (c_out, c_in, k), b: (c_out,)
    scale = gamma / jnp.sqrt(var + eps)
    return w * scale[:, None, None], (b - mean) * scale + beta


def resblock_pallas(x_ncl, params, *, ksize=5, dilation=1,
                    mm_dtype=jnp.bfloat16, batch_tile=None):
    N, c_in, L = x_ncl.shape
    (w1, b1, bn1), (w2, b2, bn2), (w3, b3, bn3) = params
    c_mid = w1.shape[0]
    pad = (ksize - 1) // 2 * dilation
    lead = _round_up(pad, 8) if pad > 0 else 0        # sublane-aligned halo

    # pad channels to the 128-lane granule (free for real models whose channel
    # counts are already multiples of 128; padded columns stay exactly zero).
    cin_p = _round_up(c_in, 128)
    cmid_p = _round_up(c_mid, 128)
    mm_isz = jnp.dtype(mm_dtype).itemsize

    # fold BN (eval mode, running stats) into conv weights / biases.
    w1f, b1f = fold_bn(w1, b1, *bn1)
    w2f, b2f = fold_bn(w2, b2, *bn2)
    w3f, b3f = fold_bn(w3, b3, *bn3)

    def pad2(w, r, c):
        return jnp.pad(w, ((0, r - w.shape[0]), (0, c - w.shape[1])))

    w1m = pad2(jnp.transpose(w1f[:, :, 0]), cin_p, cmid_p).astype(mm_dtype)   # (cin_p, cmid_p)
    w3m = pad2(jnp.transpose(w3f[:, :, 0]), cmid_p, cin_p).astype(mm_dtype)   # (cmid_p, cin_p)
    w2t = jnp.transpose(w2f, (2, 1, 0))                                       # (k, in, out)
    w2m = jnp.pad(w2t, ((0, 0), (0, cmid_p - c_mid),
                        (0, cmid_p - c_mid))).astype(mm_dtype)                # (k, cmid_p, cmid_p)
    b1m = jnp.pad(b1f, (0, cmid_p - c_mid))[None, :].astype(jnp.float32)
    b2m = jnp.pad(b2f, (0, cmid_p - c_mid))[None, :].astype(jnp.float32)
    b3m = jnp.pad(b3f, (0, cin_p - c_in))[None, :].astype(jnp.float32)

    # batch packing: several batch elements per grid step (amortizes ~0.35us
    # per-step overhead, fills the MXU M dim), but keep >= 2 parallel grid
    # steps when possible so v7x's dual TensorCores both get work.
    if batch_tile is None:
        batch_tile = max(1, (N + 1) // 2)
        per_b = (2 * L * cin_p * (mm_isz + 4)            # x (db) + f32 out (db)
                 + (L + 2 * lead) * cmid_p * mm_isz)     # dilated-conv scratch
        budget = 8 * 1024 * 1024                         # conservative for v7x
        batch_tile = max(1, min(batch_tile, budget // per_b))
    n_tiles = pl.cdiv(N, batch_tile)
    n_pad = n_tiles * batch_tile

    # NCL -> NLC, pad batch + channels, flatten to a lane-dense 2-D row slab.
    # (note: L, or batch_tile*L, should be a multiple of 8 for aligned tiling)
    x_nlc = jnp.transpose(x_ncl, (0, 2, 1))
    x_nlc = jnp.pad(x_nlc, ((0, n_pad - N), (0, 0), (0, cin_p - c_in)))
    x_flat = x_nlc.reshape(n_pad * L, cin_p).astype(mm_dtype)

    rows = batch_tile * L
    kernel = functools.partial(resblock_kernel, ksize=ksize, dilation=dilation,
                               seq_len=L, lead=lead)

    flops = 2 * n_pad * L * (cin_p * cmid_p + ksize * cmid_p * cmid_p
                             + cmid_p * cin_p)
    bytes_accessed = (x_flat.size * mm_isz + n_pad * L * cin_p * 4
                      + (w1m.size + w2m.size + w3m.size) * mm_isz
                      + (b1m.size + b2m.size + b3m.size) * 4)

    out_flat = pl.pallas_call(
        kernel,
        out_shape=jax.ShapeDtypeStruct((n_pad * L, cin_p), jnp.float32),
        grid_spec=pltpu.PrefetchScalarGridSpec(
            num_scalar_prefetch=0,
            grid=(n_tiles,),
            in_specs=[
                pl.BlockSpec((rows, cin_p), lambda n: (n, 0)),          # x slab
                pl.BlockSpec((cin_p, cmid_p), lambda n: (0, 0)),        # w1
                pl.BlockSpec((1, cmid_p), lambda n: (0, 0)),            # b1
                pl.BlockSpec((ksize, cmid_p, cmid_p), lambda n: (0, 0, 0)),  # w2
                pl.BlockSpec((1, cmid_p), lambda n: (0, 0)),            # b2
                pl.BlockSpec((cmid_p, cin_p), lambda n: (0, 0)),        # w3
                pl.BlockSpec((1, cin_p), lambda n: (0, 0)),             # b3
            ],
            out_specs=pl.BlockSpec((rows, cin_p), lambda n: (n, 0)),
            scratch_shapes=[
                pltpu.VMEM((batch_tile, L + 2 * lead, cmid_p), mm_dtype)],
        ),
        compiler_params=pltpu.CompilerParams(
            dimension_semantics=("parallel",),
            vmem_limit_bytes=32 * 1024 * 1024),
        cost_estimate=pl.CostEstimate(flops=flops, transcendentals=0,
                                      bytes_accessed=bytes_accessed),
    )(x_flat, w1m, b1m, w2m, b2m, w3m, b3m)

    out = out_flat.reshape(n_pad, L, cin_p)[:N, :, :c_in]
    return jnp.transpose(out, (0, 2, 1))               # back to (N, C_in, L)


# ----------------------------------------------------------------------------
# Pure-JAX reference (mirrors PyTorch eval-mode forward) for verification.
# ----------------------------------------------------------------------------
def resblock_ref(x, params, *, ksize=5, dilation=1, eps=1e-5):
    def conv1d(x, w, b, dil):
        p = (w.shape[2] - 1) // 2 * dil
        y = jax.lax.conv_general_dilated(
            x, w, window_strides=(1,), padding=[(p, p)], rhs_dilation=(dil,),
            dimension_numbers=("NCH", "OIH", "NCH"))
        return y + b[None, :, None]

    def bn(x, gamma, beta, mean, var):
        return ((x - mean[None, :, None]) / jnp.sqrt(var[None, :, None] + eps)
                * gamma[None, :, None] + beta[None, :, None])

    (w1, b1, bn1), (w2, b2, bn2), (w3, b3, bn3) = params
    h = jax.nn.relu(bn(conv1d(x, w1, b1, 1), *bn1))
    h = jax.nn.relu(bn(conv1d(h, w2, b2, dilation), *bn2))
    h = jax.nn.relu(bn(conv1d(h, w3, b3, 1), *bn3))
    return h + x            # dropout = identity in eval mode


# ----------------------------------------------------------------------------
def make_params(key, c_in, c_mid, ksize):
    ks = jax.random.split(key, 18)

    def conv_bn(kw, kb, kg, kbt, km, kv, c_out, c_inn, k):
        w = 0.2 * jax.random.normal(kw, (c_out, c_inn, k), jnp.float32)
        b = 0.1 * jax.random.normal(kb, (c_out,), jnp.float32)
        gamma = 1.0 + 0.1 * jax.random.normal(kg, (c_out,), jnp.float32)
        beta = 0.1 * jax.random.normal(kbt, (c_out,), jnp.float32)
        mean = 0.05 * jax.random.normal(km, (c_out,), jnp.float32)
        var = 1.0 + 0.1 * jax.random.uniform(kv, (c_out,), jnp.float32)
        return (w, b, (gamma, beta, mean, var))

    p1 = conv_bn(*ks[0:6], c_mid, c_in, 1)
    p2 = conv_bn(*ks[6:12], c_mid, c_mid, ksize)
    p3 = conv_bn(*ks[12:18], c_in, c_mid, 1)
    return (p1, p2, p3)


if __name__ == "__main__":
    N, c_in, c_mid, L = 4, 8, 16, 16
    ksize, dilation = 5, 2

    key = jax.random.PRNGKey(0)
    kx, kp = jax.random.split(key)
    x = jax.random.normal(kx, (N, c_in, L), jnp.float32)      # NCL, like PyTorch
    params = make_params(kp, c_in, c_mid, ksize)

    ref = resblock_ref(x, params, ksize=ksize, dilation=dilation)

    # f32-matmul path (v5e-friendly): tight correctness check.
    out32 = resblock_pallas(x, params, ksize=ksize, dilation=dilation,
                            mm_dtype=jnp.float32)
    out32 = jax.block_until_ready(out32)
    assert out32.shape == (N, c_in, L)
    assert jnp.allclose(out32, ref, atol=1e-4, rtol=1e-4), \
        f"f32 max abs err {jnp.max(jnp.abs(out32 - ref))}"

    # bf16-matmul path (v6e/v7x MXU): loose check (bf16 quantization error).
    out16 = resblock_pallas(x, params, ksize=ksize, dilation=dilation,
                            mm_dtype=jnp.bfloat16)
    out16 = jax.block_until_ready(out16)
    assert out16.shape == (N, c_in, L)
    assert float(jnp.max(jnp.abs(out16 - ref))) < 0.25, \
        f"bf16 max abs err {jnp.max(jnp.abs(out16 - ref))}"

    print("KERNEL_OK")
</pallas_src>

<mosaic_0001>
module attributes {stable_mosaic.version = 11 : i64} {
  func.func @resblock_kernel(%arg0: i32, %arg1: memref<32x128xf32, #tpu.memory_space<vmem>>, %arg2: memref<128x128xf32, #tpu.memory_space<vmem>>, %arg3: memref<1x128xf32, #tpu.memory_space<vmem>>, %arg4: memref<5x128x128xf32, #tpu.memory_space<vmem>>, %arg5: memref<1x128xf32, #tpu.memory_space<vmem>>, %arg6: memref<128x128xf32, #tpu.memory_space<vmem>>, %arg7: memref<1x128xf32, #tpu.memory_space<vmem>>, %arg8: memref<32x128xf32, #tpu.memory_space<vmem>>, %arg9: memref<2x32x128xf32, #tpu.memory_space<vmem>>) attributes {dimension_semantics = [#tpu.dimension_semantics<parallel>], iteration_bounds = array<i64: 2>, scalar_prefetch = 0 : i64, scratch_operands = 1 : i64, tpu.core_type = #tpu.core_type<tc>, window_params = [{transform_indices = @transform_0, window_bounds = array<i64: 32, 128>}, {pipeline_mode = #tpu.pipeline_mode<synchronous>, transform_indices = @transform_1, window_bounds = array<i64: 128, 128>}, {pipeline_mode = #tpu.pipeline_mode<synchronous>, transform_indices = @transform_2, window_bounds = array<i64: 1, 128>}, {pipeline_mode = #tpu.pipeline_mode<synchronous>, transform_indices = @transform_3, window_bounds = array<i64: 5, 128, 128>}, {pipeline_mode = #tpu.pipeline_mode<synchronous>, transform_indices = @transform_4, window_bounds = array<i64: 1, 128>}, {pipeline_mode = #tpu.pipeline_mode<synchronous>, transform_indices = @transform_5, window_bounds = array<i64: 128, 128>}, {pipeline_mode = #tpu.pipeline_mode<synchronous>, transform_indices = @transform_6, window_bounds = array<i64: 1, 128>}, {transform_indices = @transform_7, window_bounds = array<i64: 32, 128>}]} {
    %c0 = arith.constant 0 : index
    %c0_0 = arith.constant 0 : index
    %0 = vector.load %arg1[%c0, %c0_0] : memref<32x128xf32, #tpu.memory_space<vmem>>, vector<32x128xf32>
    %c0_1 = arith.constant 0 : index
    %c0_2 = arith.constant 0 : index
    %1 = vector.load %arg2[%c0_1, %c0_2] : memref<128x128xf32, #tpu.memory_space<vmem>>, vector<128x128xf32>
    %cst = arith.constant dense<0.000000e+00> : vector<32x128xf32>
    %2 = tpu.matmul %0, %1, %cst {dimension_numbers = #tpu.dot_dimension_numbers<[1], [0], [0], [1], [0, 0, 1, 1], [], []>} : vector<32x128xf32>, vector<128x128xf32>, vector<32x128xf32> -> vector<32x128xf32>
    %c0_3 = arith.constant 0 : index
    %c0_4 = arith.constant 0 : index
    %3 = vector.load %arg3[%c0_3, %c0_4] : memref<1x128xf32, #tpu.memory_space<vmem>>, vector<1x128xf32>
    %4 = vector.broadcast %3 : vector<1x128xf32> to vector<32x128xf32>
    %5 = arith.addf %2, %4 : vector<32x128xf32>
    %cst_5 = arith.constant 0.000000e+00 : f32
    %6 = vector.broadcast %cst_5 : f32 to vector<32x128xf32>
    %7 = arith.maximumf %5, %6 : vector<32x128xf32>
    %cst_6 = arith.constant 0.000000e+00 : f32
    %8 = vector.broadcast %cst_6 : f32 to vector<2x8x128xf32>
    %c0_7 = arith.constant 0 : index
    %c0_8 = arith.constant 0 : index
    %c0_9 = arith.constant 0 : index
    %9 = vector.load %arg9[%c0_7, %c0_8, %c0_9] : memref<2x32x128xf32, #tpu.memory_space<vmem>>, vector<2x8x128xf32>
    tpu.vector_store %arg9[%c0_7, %c0_8, %c0_9], %8 {strides = array<i32>} : memref<2x32x128xf32, #tpu.memory_space<vmem>>, vector<2x8x128xf32>,
    %c0_10 = arith.constant 0 : index
    %c24 = arith.constant 24 : index
    %c0_11 = arith.constant 0 : index
    %10 = vector.load %arg9[%c0_10, %c24, %c0_11] : memref<2x32x128xf32, #tpu.memory_space<vmem>>, vector<2x8x128xf32>
    tpu.vector_store %arg9[%c0_10, %c24, %c0_11], %8 {strides = array<i32>} : memref<2x32x128xf32, #tpu.memory_space<vmem>>, vector<2x8x128xf32>,
    %11 = vector.shape_cast %7 : vector<32x128xf32> to vector<2x16x128xf32>
    %c0_12 = arith.constant 0 : index
    %c8 = arith.constant 8 : index
    %c0_13 = arith.constant 0 : index
    %12 = vector.load %arg9[%c0_12, %c8, %c0_13] : memref<2x32x128xf32, #tpu.memory_space<vmem>>, vector<2x16x128xf32>
    tpu.vector_store %arg9[%c0_12, %c8, %c0_13], %11 {strides = array<i32>} : memref<2x32x128xf32, #tpu.memory_space<vmem>>, vector<2x16x128xf32>,
    %c0_14 = arith.constant 0 : index
    %c4 = arith.constant 4 : index
    %c0_15 = arith.constant 0 : index
    %13 = vector.load %arg9[%c0_14, %c4, %c0_15] : memref<2x32x128xf32, #tpu.memory_space<vmem>>, vector<2x16x128xf32>
    %14 = vector.shape_cast %13 : vector<2x16x128xf32> to vector<32x128xf32>
    %c0_16 = arith.constant 0 : index
    %c0_17 = arith.constant 0 : index
    %c0_18 = arith.constant 0 : index
    %15 = vector.load %arg4[%c0_16, %c0_17, %c0_18] : memref<5x128x128xf32, #tpu.memory_space<vmem>>, vector<1x128x128xf32>
    %16 = vector.shape_cast %15 : vector<1x128x128xf32> to vector<128x128xf32>
    %cst_19 = arith.constant dense<0.000000e+00> : vector<32x128xf32>
    %17 = tpu.matmul %14, %16, %cst_19 {dimension_numbers = #tpu.dot_dimension_numbers<[1], [0], [0], [1], [0, 0, 1, 1], [], []>} : vector<32x128xf32>, vector<128x128xf32>, vector<32x128xf32> -> vector<32x128xf32>
    %c0_20 = arith.constant 0 : index
    %c6 = arith.constant 6 : index
    %c0_21 = arith.constant 0 : index
    %18 = vector.load %arg9[%c0_20, %c6, %c0_21] : memref<2x32x128xf32, #tpu.memory_space<vmem>>, vector<2x16x128xf32>
    %19 = vector.shape_cast %18 : vector<2x16x128xf32> to vector<32x128xf32>
    %c1 = arith.constant 1 : index
    %c0_22 = arith.constant 0 : index
    %c0_23 = arith.constant 0 : index
    %20 = vector.load %arg4[%c1, %c0_22, %c0_23] : memref<5x128x128xf32, #tpu.memory_space<vmem>>, vector<1x128x128xf32>
    %21 = vector.shape_cast %20 : vector<1x128x128xf32> to vector<128x128xf32>
    %cst_24 = arith.constant dense<0.000000e+00> : vector<32x128xf32>
    %22 = tpu.matmul %19, %21, %cst_24 {dimension_numbers = #tpu.dot_dimension_numbers<[1], [0], [0], [1], [0, 0, 1, 1], [], []>} : vector<32x128xf32>, vector<128x128xf32>, vector<32x128xf32> -> vector<32x128xf32>
    %23 = arith.addf %17, %22 : vector<32x128xf32>
    %c0_25 = arith.constant 0 : index
    %c8_26 = arith.constant 8 : index
    %c0_27 = arith.constant 0 : index
    %24 = vector.load %arg9[%c0_25, %c8_26, %c0_27] : memref<2x32x128xf32, #tpu.memory_space<vmem>>, vector<2x16x128xf32>
    %25 = vector.shape_cast %24 : vector<2x16x128xf32> to vector<32x128xf32>
    %c2 = arith.constant 2 : index
    %c0_28 = arith.constant 0 : index
    %c0_29 = arith.constant 0 : index
    %26 = vector.load %arg4[%c2, %c0_28, %c0_29] : memref<5x128x128xf32, #tpu.memory_space<vmem>>, vector<1x128x128xf32>
    %27 = vector.shape_cast %26 : vector<1x128x128xf32> to vector<128x128xf32>
    %cst_30 = arith.constant dense<0.000000e+00> : vector<32x128xf32>
    %28 = tpu.matmul %25, %27, %cst_30 {dimension_numbers = #tpu.dot_dimension_numbers<[1], [0], [0], [1], [0, 0, 1, 1], [], []>} : vector<32x128xf32>, vector<128x128xf32>, vector<32x128xf32> -> vector<32x128xf32>
    %29 = arith.addf %23, %28 : vector<32x128xf32>
    %c0_31 = arith.constant 0 : index
    %c10 = arith.constant 10 : index
    %c0_32 = arith.constant 0 : index
    %30 = vector.load %arg9[%c0_31, %c10, %c0_32] : memref<2x32x128xf32, #tpu.memory_space<vmem>>, vector<2x16x128xf32>
    %31 = vector.shape_cast %30 : vector<2x16x128xf32> to vector<32x128xf32>
    %c3 = arith.constant 3 : index
    %c0_33 = arith.constant 0 : index
    %c0_34 = arith.constant 0 : index
    %32 = vector.load %arg4[%c3, %c0_33, %c0_34] : memref<5x128x128xf32, #tpu.memory_space<vmem>>, vector<1x128x128xf32>
    %33 = vector.shape_cast %32 : vector<1x128x128xf32> to vector<128x128xf32>
    %cst_35 = arith.constant dense<0.000000e+00> : vector<32x128xf32>
    %34 = tpu.matmul %31, %33, %cst_35 {dimension_numbers = #tpu.dot_dimension_numbers<[1], [0], [0], [1], [0, 0, 1, 1], [], []>} : vector<32x128xf32>, vector<128x128xf32>, vector<32x128xf32> -> vector<32x128xf32>
    %35 = arith.addf %29, %34 : vector<32x128xf32>
    %c0_36 = arith.constant 0 : index
    %c12 = arith.constant 12 : index
    %c0_37 = arith.constant 0 : index
    %36 = vector.load %arg9[%c0_36, %c12, %c0_37] : memref<2x32x128xf32, #tpu.memory_space<vmem>>, vector<2x16x128xf32>
    %37 = vector.shape_cast %36 : vector<2x16x128xf32> to vector<32x128xf32>
    %c4_38 = arith.constant 4 : index
    %c0_39 = arith.constant 0 : index
    %c0_40 = arith.constant 0 : index
    %38 = vector.load %arg4[%c4_38, %c0_39, %c0_40] : memref<5x128x128xf32, #tpu.memory_space<vmem>>, vector<1x128x128xf32>
    %39 = vector.shape_cast %38 : vector<1x128x128xf32> to vector<128x128xf32>
    %cst_41 = arith.constant dense<0.000000e+00> : vector<32x128xf32>
    %40 = tpu.matmul %37, %39, %cst_41 {dimension_numbers = #tpu.dot_dimension_numbers<[1], [0], [0], [1], [0, 0, 1, 1], [], []>} : vector<32x128xf32>, vector<128x128xf32>, vector<32x128xf32> -> vector<32x128xf32>
    %41 = arith.addf %35, %40 : vector<32x128xf32>
    %c0_42 = arith.constant 0 : index
    %c0_43 = arith.constant 0 : index
    %42 = vector.load %arg5[%c0_42, %c0_43] : memref<1x128xf32, #tpu.memory_space<vmem>>, vector<1x128xf32>
    %43 = vector.broadcast %42 : vector<1x128xf32> to vector<32x128xf32>
    %44 = arith.addf %41, %43 : vector<32x128xf32>
    %cst_44 = arith.constant 0.000000e+00 : f32
    %45 = vector.broadcast %cst_44 : f32 to vector<32x128xf32>
    %46 = arith.maximumf %44, %45 : vector<32x128xf32>
    %c0_45 = arith.constant 0 : index
    %c0_46 = arith.constant 0 : index
    %47 = vector.load %arg6[%c0_45, %c0_46] : memref<128x128xf32, #tpu.memory_space<vmem>>, vector<128x128xf32>
    %cst_47 = arith.constant dense<0.000000e+00> : vector<32x128xf32>
    %48 = tpu.matmul %46, %47, %cst_47 {dimension_numbers = #tpu.dot_dimension_numbers<[1], [0], [0], [1], [0, 0, 1, 1], [], []>} : vector<32x128xf32>, vector<128x128xf32>, vector<32x128xf32> -> vector<32x128xf32>
    %c0_48 = arith.constant 0 : index
    %c0_49 = arith.constant 0 : index
    %49 = vector.load %arg7[%c0_48, %c0_49] : memref<1x128xf32, #tpu.memory_space<vmem>>, vector<1x128xf32>
    %50 = vector.broadcast %49 : vector<1x128xf32> to vector<32x128xf32>
    %51 = arith.addf %48, %50 : vector<32x128xf32>
    %cst_50 = arith.constant 0.000000e+00 : f32
    %52 = vector.broadcast %cst_50 : f32 to vector<32x128xf32>
    %53 = arith.maximumf %51, %52 : vector<32x128xf32>
    %54 = arith.addf %53, %0 : vector<32x128xf32>
    %c0_51 = arith.constant 0 : index
    %c0_52 = arith.constant 0 : index
    %55 = vector.load %arg8[%c0_51, %c0_52] : memref<32x128xf32, #tpu.memory_space<vmem>>, vector<32x128xf32>
    tpu.vector_store %arg8[%c0_51, %c0_52], %54 {strides = array<i32>} : memref<32x128xf32, #tpu.memory_space<vmem>>, vector<32x128xf32>,
    return
  }
  func.func @transform_0(%arg0: i32) -> (i32, i32) {
    %c0_i32 = arith.constant 0 : i32
    %c0_i32_0 = arith.constant 0 : i32
    return %arg0, %c0_i32 : i32, i32
  }
  func.func @transform_1(%arg0: i32) -> (i32, i32) {
    %c0_i32 = arith.constant 0 : i32
    %c0_i32_0 = arith.constant 0 : i32
    %c0_i32_1 = arith.constant 0 : i32
    return %c0_i32, %c0_i32_0 : i32, i32
  }
  func.func @transform_2(%arg0: i32) -> (i32, i32) {
    %c0_i32 = arith.constant 0 : i32
    %c0_i32_0 = arith.constant 0 : i32
    %c0_i32_1 = arith.constant 0 : i32
    return %c0_i32, %c0_i32_0 : i32, i32
  }
  func.func @transform_3(%arg0: i32) -> (i32, i32, i32) {
    %c0_i32 = arith.constant 0 : i32
    %c0_i32_0 = arith.constant 0 : i32
    %c0_i32_1 = arith.constant 0 : i32
    %c0_i32_2 = arith.constant 0 : i32
    return %c0_i32, %c0_i32_0, %c0_i32_1 : i32, i32, i32
  }
  func.func @transform_4(%arg0: i32) -> (i32, i32) {
    %c0_i32 = arith.constant 0 : i32
    %c0_i32_0 = arith.constant 0 : i32
    %c0_i32_1 = arith.constant 0 : i32
    return %c0_i32, %c0_i32_0 : i32, i32
  }
  func.func @transform_5(%arg0: i32) -> (i32, i32) {
    %c0_i32 = arith.constant 0 : i32
    %c0_i32_0 = arith.constant 0 : i32
    %c0_i32_1 = arith.constant 0 : i32
    return %c0_i32, %c0_i32_0 : i32, i32
  }
  func.func @transform_6(%arg0: i32) -> (i32, i32) {
    %c0_i32 = arith.constant 0 : i32
    %c0_i32_0 = arith.constant 0 : i32
    %c0_i32_1 = arith.constant 0 : i32
    return %c0_i32, %c0_i32_0 : i32, i32
  }
  func.func @transform_7(%arg0: i32) -> (i32, i32) {
    %c0_i32 = arith.constant 0 : i32
    %c0_i32_0 = arith.constant 0 : i32
    return %arg0, %c0_i32 : i32, i32
  }
}

</mosaic_0001>

<bundles_post_ra>
// kernel: tpu_custom_call.1
= control target key start
LH: loop header
LB: loop body
LE: loop exit
PB: predicated region body
PF: predicated region fallthrough
CT: control target
= control target key end

     0   :  { %12 = vsyncpa [#allocation4], 0  ;;  %s2587_s0 = inlined_call_operand.hbm [shape: f32[64,128], index: 0, kind: input, shape index: {}]   ;;  %s2588_s1 = inlined_call_operand.hbm [shape: f32[128,128], index: 1, kind: input, shape index: {}]   ;;  %s2589_s2 = inlined_call_operand.vmem [shape: f32[1,128], index: 2, kind: input, shape index: {}]   ;;  %s2590_s3 = inlined_call_operand.hbm [shape: f32[5,128,128], index: 3, kind: input, shape index: {}]   ;;  %s2591_s4 = inlined_call_operand.vmem [shape: f32[1,128], index: 4, kind: input, shape index: {}]   ;;  %s2592_s5 = inlined_call_operand.hbm [shape: f32[128,128], index: 5, kind: input, shape index: {}]   ;;  %s2593_s6 = inlined_call_operand.vmem [shape: f32[1,128], index: 6, kind: input, shape index: {}]   ;;  %s2594_s7 = inlined_call_operand.hbm [shape: f32[64,128], index: 7, kind: output, shape index: {}]  }
   0x1   :  { %14 = vsyncpa [#allocation4 + $0x1], 0 }
   0x2   :  { %15 = vsyncpa [#allocation7], 0 }
   0x3   :  { %16 = vsyncpa [#allocation10], 0 }
   0x4   :  { %17 = vsyncpa [#allocation5], 0 }
   0x5   :  { %19 = vsyncpa [#allocation5 + $0x1], 0  ;;  %s2252_s24 = smov 0   ;;  %s2254_s25 = smov 0  }
   0x6   :  { %s2256_s26 = smov 0   ;;  %s2258_s27 = smov 0  }
   0x7 LB: > { %s2273_s28 = sadd.s32 4294967295, %s2200_s27   ;;  %s1259_s29 = sadd.s32 4294967294, %s2200_s27   ;;  %s2200_s27 = sphi %s2258_s27, %s2620_s27   ;;  %s2196_s26 = sphi %s2256_s26, %s2619_s26   ;;  %s2192_s25 = sphi %s2254_s25, %s2618_s25   ;;  %s2188_s24 = sphi %s2252_s24, %s2617_s24  }
   0x8   : > { %p45_p0 = scmp.ne.s32.totalorder %s2192_s25, %s2188_s24  ;;  %p2595_p1 = scmp.eq.s32.totalorder %s2273_s28, 0 }
   0x9   : > { %p201_p3 = scmp.eq.s32.totalorder %s1259_s29, 1  ;;  %p1260_p5 = scmp.ge.s32.totalorder %s2200_s27, 1 }
   0xa   : > { %p2282_p4 = por %p2595_p1, %p45_p0  ;;  %p208_p7 = scmp.lt.s32.totalorder %s2200_s27, 3 }
   0xb   : > { %p2287_p6 = por %p201_p3, %p45_p0  ;;  %s2202_s10 = smov [#allocation6]  }
   0xc   : > { %s2599_s30 = scalar_select %p2282_p4, 1, 0 }
   0xd   : > { %s2600_s8 = scalar_select %p2287_p6, 1, 0 }
   0xe   : > { %p2292_p8 = pnand %p1260_p5, %p208_p7  ;;  %s220_s11 = sshll.u32 %s2202_s10, 4  ;;  %s2296_s11 = int_to_ptr.vmem [resolvable:$true] %s220_s11 }
   0xf   : > { %2601 = sst [smem:[#allocation16_spill]] %s2600_s8  ;;  %s2203_s13 = smov [#allocation8]  }
  0x10   : > { %s2602_s9 = scalar_select %p2292_p8, 1, 0 }
  0x11   : > { %p1946_p9 = pneg %p2292_p8  ;;  %s236_s14 = sshll.u32 %s2203_s13, 4  ;;  %s2307_s14 = int_to_ptr.vmem [resolvable:$true] %s236_s14 }
  0x12   : > { %s2204_s15 = smov [#allocation9]   ;;  %s2012_s19 = scalar_lea.hbm %s2588_s1, 2048 }
  0x13   : > { %p2303_p11 = pnand %p1946_p9, %p2595_p1  ;;  %s2309_s16 = sshll.u32 %s2204_s15, 4  ;;  %s253_s16 = int_to_ptr.vmem [resolvable:$true] %s2309_s16 }
  0x14   : > { %p2013_p12 = scmp.ne.s32.totalorder %s2588_s1, %s2012_s19  ;;  %p2019_p5 = scmp.lt.u32.totalorder %s2012_s19, %s2588_s1 }
  0x15   : > { %p2319_p13 = pneg %p2303_p11 }
  0x17   : > { %p2015_p0 = pnand %p2319_p13, %p2013_p12 }
  0x19   : > { %p2016_p3 = pneg %p2015_p0 }
  0x1b   : > { %p2021_p7 = pnand %p2019_p5, %p2016_p3 }
  0x1d   : > { %2024 = shalt.err (!%p2021_p7)
}
  0x1e   : > { %s2025_s10 = scalar_lea.vmem %s2296_s11, 2048  ;;  %p2033_p2 = scmp.lt.s32.totalorder %s2296_s11, %s2296_s11 }
  0x1f   : > { %p2026_p9 = scmp.ne.s32.totalorder %s2296_s11, %s2025_s10  ;;  %p2034_p6 = scmp.lt.s32.totalorder %s2025_s10, %s2025_s10 }
  0x21   : > { %p2028_p10 = pnand %p2026_p9, %p2319_p13  ;;  %p2035_p12 = por %p2034_p6, %p2033_p2 }
  0x23   : > { %p2029_p1 = pneg %p2028_p10 }
  0x25   : > { %p2036_p0 = pnand %p2035_p12, %p2029_p1 }
  0x27   : > { %2039 = shalt.err (!%p2036_p0)
}
  0x28   : > { %s2205_s13 = smov 128   ;;  %s2206_s15 = smov 8  }
  0x29   : > { %1949 = dma.hbm_to_vmem [thread:$0]  (!%p2303_p11), %s2588_s1, 2048, %s2296_s11, [#allocation7], %s2205_s13, %s2205_s13, %s2206_s15  }
  0x2a   : > { %s2040_s21 = scalar_lea.hbm %s2590_s3, 10240 }
  0x2b   : > { %p2041_p1 = scmp.ne.s32.totalorder %s2590_s3, %s2040_s21  ;;  %p2047_p10 = scmp.lt.u32.totalorder %s2040_s21, %s2590_s3 }
  0x2d   : > { %p2043_p2 = pnand %p2041_p1, %p2319_p13 }
  0x2f   : > { %p2044_p6 = pneg %p2043_p2 }
  0x31   : > { %p2049_p3 = pnand %p2047_p10, %p2044_p6 }
  0x33   : > { %2052 = shalt.err (!%p2049_p3)
}
  0x34   : > { %s2053_s11 = scalar_lea.vmem %s2307_s14, 10240  ;;  %p2061_p12 = scmp.lt.s32.totalorder %s2307_s14, %s2307_s14 }
  0x35   : > { %p2054_p5 = scmp.ne.s32.totalorder %s2307_s14, %s2053_s11  ;;  %p2062_p0 = scmp.lt.s32.totalorder %s2053_s11, %s2053_s11 }
  0x37   : > { %p2056_p7 = pnand %p2054_p5, %p2319_p13  ;;  %p2063_p1 = por %p2062_p0, %p2061_p12 }
  0x39   : > { %p2057_p9 = pneg %p2056_p7 }
  0x3b   : > { %p2064_p2 = pnand %p2063_p1, %p2057_p9 }
  0x3d   : > { %2067 = shalt.err (!%p2064_p2)
}
  0x3e   : > { %1952 = dma.hbm_to_vmem [thread:$0]  (!%p2303_p11), %s2590_s3, 10240, %s2307_s14, [#allocation7], %s2205_s13, %s2205_s13, %s2206_s15  }
  0x3f   : > { %s2068_s20 = scalar_lea.hbm %s2592_s5, 2048 }
  0x40   : > { %p2069_p6 = scmp.ne.s32.totalorder %s2592_s5, %s2068_s20  ;;  %p2075_p5 = scmp.lt.u32.totalorder %s2068_s20, %s2592_s5 }
  0x42   : > { %p2071_p10 = pnand %p2069_p6, %p2319_p13 }
  0x44   : > { %p2072_p3 = pneg %p2071_p10 }
  0x46   : > { %p2077_p7 = pnand %p2075_p5, %p2072_p3 }
  0x48   : > { %2080 = shalt.err (!%p2077_p7)
}
  0x49   : > { %s2081_s11 = scalar_lea.vmem %s253_s16, 2048  ;;  %p2089_p1 = scmp.lt.s32.totalorder %s253_s16, %s253_s16 }
  0x4a   : > { %p2082_p9 = scmp.ne.s32.totalorder %s253_s16, %s2081_s11  ;;  %p2090_p2 = scmp.lt.s32.totalorder %s2081_s11, %s2081_s11 }
  0x4c   : > { %p2084_p12 = pnand %p2082_p9, %p2319_p13  ;;  %p2091_p4 = por %p2090_p2, %p2089_p1 }
  0x4e   : > { %p2085_p0 = pneg %p2084_p12 }
  0x50   : > { %p2092_p8 = pnand %p2091_p4, %p2085_p0 }
  0x52   : > { %2095 = shalt.err (!%p2092_p8)
}
  0x53   : > { %1955 = dma.hbm_to_vmem [thread:$0]  (!%p2303_p11), %s2592_s5, 2048, %s253_s16, [#allocation10], %s2205_s13, %s2205_s13, %s2206_s15  }
  0x54   : > { %s2392_s22 = sadd.s32 1, %s2200_s27   ;;  %s32_s17 = sadd.s32 1, %s2196_s26 }
  0x55   : > { %s29_s12 = ssub.s32 %s2200_s27, %s2392_s22  ;;  %p39_p8 = scmp.ne.s32.totalorder %s2196_s26, %s2192_s25 }
  0x56   : > { %p30_p4 = scmp.eq.s32.totalorder %s29_s12, 0  ;;  %p40_p13 = scmp.eq.s32.totalorder %s2200_s27, 0 }
  0x57   : > { %p1967_p6 = scmp.lt.s32.totalorder %s2200_s27, 2  ;;  %p2605_p3 = scmp.eq.s32.totalorder %s2273_s28, 1 }
  0x58   : > { %s2402_s18 = scalar_select %p30_p4, %s2196_s26, %s32_s17  }
  0x59   : > { %p41_p10 = por %p40_p13, %p39_p8  ;;  %p2406_p5 = por %p2605_p3, %p39_p8 }
  0x5a   : > { %s269_s20 = sand.u32 1, %s2196_s26   ;;  %s1282_s21 = sshll.u32 %s2200_s27, 9 }
  0x5b   : > { %s1265_s16 = sshll.u32 %s269_s20, 5  ;;  %s2415_s10 = scalar_lea.hbm %s2587_s0, %s1282_s21 }
  0x5c   : > { %s273_s11 = scalar_lea.vmem [#allocation3], %s1265_s16  ;;  %p2417_p11 = pnand %p1967_p6, %p41_p10 }
  0x5d   : > { %s280_s14 = sshll.u32 %s273_s11, 4  ;;  %s2423_s12 = scalar_lea.sflag [#allocation4], %s269_s20  ;;  %s2421_s14 = int_to_ptr.vmem [resolvable:$true] %s280_s14 }
  0x5e   : > { %s2096_s17 = scalar_lea.hbm %s2415_s10, 512  ;;  %p2098_p9 = pneg %p2417_p11 }
  0x5f   : > { %p2097_p7 = scmp.ne.s32.totalorder %s2415_s10, %s2096_s17  ;;  %s2101_s23 = scalar_lea.hbm %s2587_s0, 1024 }
  0x60   : > { %p2102_p1 = scmp.lt.u32.totalorder %s2415_s10, %s2587_s0  ;;  %p2103_p2 = scmp.lt.u32.totalorder %s2101_s23, %s2096_s17 }
  0x61   : > { %p2099_p12 = pnand %p2098_p9, %p2097_p7  ;;  %p2105_p8 = scmp.lt.u32.totalorder %s2096_s17, %s2415_s10 }
  0x62   : > { %p2104_p4 = por %p2103_p2, %p2102_p1 }
  0x63   : > { %p2100_p0 = pneg %p2099_p12 }
  0x64   : > { %p2106_p13 = por %p2105_p8, %p2104_p4 }
  0x66   : > { %p2107_p6 = pnand %p2106_p13, %p2100_p0 }
  0x68   : > { %2110 = shalt.err (!%p2107_p6)
}
  0x69   : > { %s2111_s20 = scalar_lea.vmem %s2421_s14, 512  ;;  %s2207_s21 = smov [#allocation3]  }
  0x6a   : > { %p2112_p10 = scmp.ne.s32.totalorder %s2421_s14, %s2111_s20  ;;  %s2116_s16 = sshll.u32 %s2207_s21, 4  ;;  %s2117_s16 = int_to_ptr.vmem [resolvable:$false] %s2116_s16 }
  0x6b   : > { %s2118_s29 = scalar_lea.vmem %s2117_s16, 1024  ;;  %p2119_p12 = scmp.lt.s32.totalorder %s2421_s14, %s2117_s16 }
  0x6c   : > { %p2114_p3 = pnand %p2112_p10, %p2098_p9  ;;  %p2120_p1 = scmp.lt.s32.totalorder %s2118_s29, %s2111_s20 }
  0x6e   : > { %p2115_p7 = pneg %p2114_p3  ;;  %p2121_p2 = por %p2120_p1, %p2119_p12 }
  0x70   : > { %p2122_p4 = pnand %p2121_p2, %p2115_p7 }
  0x72   : > { %2125 = shalt.err (!%p2122_p4)
}
  0x73   : > { %1959 = dma.hbm_to_vmem [thread:$0]  (!%p2417_p11), %s2415_s10, 512, %s2421_s14, %s2423_s12, %s2205_s13, %s2205_s13, %s2206_s15  }
  0x74   : > { %p2608_p9 = scmp.ne.s32.totalorder %s2602_s9, 0 }
  0x75   : > { %s2457_s17 = sand.u32 (!%p2608_p9), 1, %s2192_s25   ;;  %p2609_p0 = scmp.ne.s32.totalorder (!%p2608_p9), %s2599_s30, 0 }
  0x76   : > { %292 = sbr.rel (%p2608_p9) target bundleno = 949 (0x3b5), region = 48  ;;  %s1269_s23 = sshll.u32 (!%p2608_p9), %s2457_s17, 5 }
  0x77   : > { %s295_s11 = scalar_lea.sflag (!%p2608_p9), [#allocation4], %s2457_s17  ;;  %s2463_s8 = scalar_lea.vmem (!%p2608_p9), [#allocation3], %s1269_s23 }
  0x7d   : > { %2171 = dma.done.wait (%p2609_p0), %s295_s11, 512  }
  0x7e   : > { %2173 = vsyncadd (%p2609_p0), %s295_s11, 4294966784  ;;  %p2610_p11 = scmp.eq.s32.totalorder %s2273_s28, 0 }
  0x80   : > { %2175 = dma.done.wait (%p2610_p11), [#allocation7], 12288   ;;  %p2611_p8 = pmov %p2610_p11 }
  0x82   : > { %2177 = vsyncadd (%p2611_p8), [#allocation7], 4294955008  ;;  %p2612_p13 = pmov %p2611_p8 }
  0x83   : > { %p2613_p6 = pmov %p2611_p8 }
  0x84   : > { %2179 = dma.done.wait (%p2612_p13), [#allocation10], 2048  }
  0x85   : > { %2181 = vsyncadd (%p2613_p6), [#allocation10], 4294965248  ;;  %v347_v0 = vld [vmem:[#allocation6] sm:$0xff]  ;;  %v348_v1 = vld [vmem:[#allocation6 + $0x8] sm:$0xff]  ;;  %s340_s12 = scalar_lea.vmem [#allocation11], %s1269_s23  ;;  %s1283_s21 = sshll.u32 %s2273_s28, 9 }
  0x86   : > { %v349_v2 = vld [vmem:[#allocation6 + $0x10] sm:$0xff]  ;;  %v1690_v3 = vpack.c.bf16 %v348_v1, %v347_v0  ;;  %v350_v4 = vld [vmem:[#allocation6 + $0x18] sm:$0xff]  ;;  %v351_v6 = vld [vmem:[#allocation6 + $0x20] sm:$0xff]  ;;  %s1157_s20 = sshll.u32 %s340_s12, 4  ;;  %s2542_s23 = scalar_lea.hbm %s2594_s7, %s1283_s21  ;;  %s2536_s20 = int_to_ptr.vmem [resolvable:$true] %s1157_s20 }
  0x87   : > { %v1694_v5 = vpack.c.bf16 %v350_v4, %v349_v2  ;;  %v352_v7 = vld [vmem:[#allocation6 + $0x28] sm:$0xff]  ;;  %v2478_v9 = vld [vmem:[%s2463_s8] sm:$0xff]  ;;  %v353_v10 = vld [vmem:[#allocation6 + $0x30] sm:$0xff]  ;;  %s1144_s28 = scalar_lea.sflag [#allocation5], %s2457_s17  ;;  %s2126_s11 = scalar_lea.vmem %s2536_s20, 512 }
  0x88   : > { %1691 = vmatprep.subr.bf16.mxu0 %v1690_v3  ;;  %v1698_v8 = vpack.c.bf16 %v352_v7, %v351_v6  ;;  %v354_v11 = vld [vmem:[#allocation6 + $0x38] sm:$0xff]  ;;  %1456 = vmatprep.mubr.f32.mxu0 %v2478_v9  ;;  %v471_v12 = vld [vmem:[#allocation8] sm:$0xff]  ;;  %v472_v13 = vld [vmem:[#allocation8 + $0x8] sm:$0xff]  ;;  %v2208_v6 = vmov 0.0   ;;  %p2127_p10 = scmp.ne.s32.totalorder %s2536_s20, %s2126_s11 }
  0x89   : > { %1693 = vmatpush3.bf16.msra.mxu0 %v1690_v3  ;;  %v1754_v14 = vpack.c.bf16 %v472_v13, %v471_v12  ;;  %v473_v15 = vld [vmem:[#allocation8 + $0x10] sm:$0xff]  ;;  %v474_v16 = vld [vmem:[#allocation8 + $0x18] sm:$0xff]  ;;  %v1702_v17 = vpack.c.bf16 %v354_v11, %v353_v10  ;;  %v475_v19 = vld [vmem:[#allocation8 + $0x20] sm:$0xff]  ;;  %459 = vst [vmem:[#allocation2] sm:$0xff] %v2208_v6 }
  0x8a   : > { %1695 = vmatprep.subr.bf16.mxu0 %v1694_v5  ;;  %v1758_v18 = vpack.c.bf16 %v474_v16, %v473_v15  ;;  %v476_v20 = vld [vmem:[#allocation8 + $0x28] sm:$0xff]  ;;  %v355_v21 = vld [vmem:[#allocation6 + $0x40] sm:$0xff]  ;;  %v477_v25 = vld [vmem:[#allocation8 + $0x30] sm:$0xff]  ;;  %460 = vst [vmem:[#allocation2 + $0x20] sm:$0xff] %v2208_v6  ;;  %p2128_p3 = pnand %p2127_p10, %p2406_p5 }
  0x8b   : > { %v356_v22 = vld [vmem:[#allocation6 + $0x48] sm:$0xff]  ;;  %1755 = vmatprep.subr.bf16.mxu1 %v1754_v14  ;;  %v1762_v23 = vpack.c.bf16 %v476_v20, %v475_v19  ;;  %v478_v26 = vld [vmem:[#allocation8 + $0x38] sm:$0xff]  ;;  %v357_v27 = vld [vmem:[#allocation6 + $0x50] sm:$0xff]  ;;  %461 = vst [vmem:[#allocation2 + $0x18] sm:$0xff] %v2208_v6 }
  0x8c   : > { %1757 = vmatpush3.bf16.msra.mxu1 %v1754_v14  ;;  %v1706_v24 = vpack.c.bf16 %v356_v22, %v355_v21  ;;  %v358_v28 = vld [vmem:[#allocation6 + $0x58] sm:$0xff]  ;;  %v1766_v29 = vpack.c.bf16 %v478_v26, %v477_v25  ;;  %v479_v31 = vld [vmem:[#allocation8 + $0x40] sm:$0xff]  ;;  %v480_v32 = vld [vmem:[#allocation8 + $0x48] sm:$0xff]  ;;  %462 = vst [vmem:[#allocation2 + $0x38] sm:$0xff] %v2208_v6  ;;  %p2129_p7 = pneg %p2128_p3 }
  0x8d   : > { %1697 = vmatpush3.bf16.msra.mxu0 %v1694_v5  ;;  %1759 = vmatprep.subr.bf16.mxu1 %v1758_v18  ;;  %v1710_v30 = vpack.c.bf16 %v358_v28, %v357_v27  ;;  %v359_v33 = vld [vmem:[#allocation6 + $0x60] sm:$0xff]  ;;  %v360_v34 = vld [vmem:[#allocation6 + $0x68] sm:$0xff]  ;;  %v1770_v35 = vpack.c.bf16 %v480_v32, %v479_v31  ;;  %v361_v37 = vld [vmem:[#allocation6 + $0x70] sm:$0xff] }
  0x8e   : > { %1699 = vmatprep.subr.bf16.mxu0 %v1698_v8  ;;  %v1714_v36 = vpack.c.bf16 %v360_v34, %v359_v33  ;;  %v362_v38 = vld [vmem:[#allocation6 + $0x78] sm:$0xff]  ;;  %v492_v40 = vld [vmem:[#allocation8 + $0x80] sm:$0xff]  ;;  %v493_v41 = vld [vmem:[#allocation8 + $0x88] sm:$0xff] }
  0x8f   : > { %v1718_v39 = vpack.c.bf16 %v362_v38, %v361_v37  ;;  %v1722_v42 = vpack.c.bf16 %v493_v41, %v492_v40  ;;  %v494_v43 = vld [vmem:[#allocation8 + $0x90] sm:$0xff]  ;;  %v495_v44 = vld [vmem:[#allocation8 + $0x98] sm:$0xff]  ;;  %v2482_v45 = vld [vmem:[%s2463_s8 + $0x8] sm:$0xff] }
  0x90   : > { %1761 = vmatpush3.bf16.msra.mxu1 %v1758_v18  ;;  %v2485_v46 = vld [vmem:[%s2463_s8 + $0x10] sm:$0xff]  ;;  %v1726_v47 = vpack.c.bf16 %v495_v44, %v494_v43  ;;  %v496_v48 = vld [vmem:[#allocation8 + $0xa0] sm:$0xff]  ;;  %v497_v49 = vld [vmem:[#allocation8 + $0xa8] sm:$0xff] }
  0x91   : > { %1701 = vmatpush3.bf16.msra.mxu0 %v1698_v8  ;;  %1763 = vmatprep.subr.bf16.mxu1 %v1762_v23  ;;  %v2490_v50 = vld [vmem:[%s2463_s8 + $0x18] sm:$0xff]  ;;  %v1730_v51 = vpack.c.bf16 %v497_v49, %v496_v48  ;;  %v498_v52 = vld [vmem:[#allocation8 + $0xb0] sm:$0xff]  ;;  %v500_v55 = vld [vmem:[#allocation8 + $0xc0] sm:$0xff]  ;;  %s2209_s8 = smov [#allocation11]  }
  0x92   : > { %1703 = vmatprep.subr.bf16.mxu0 %v1702_v17  ;;  %v499_v53 = vld [vmem:[#allocation8 + $0xb8] sm:$0xff]  ;;  %v501_v56 = vld [vmem:[#allocation8 + $0xc8] sm:$0xff]  ;;  %v481_v58 = vld [vmem:[#allocation8 + $0x50] sm:$0xff]  ;;  %s2130_s30 = sshll.u32 %s2209_s8, 4  ;;  %s2131_s30 = int_to_ptr.vmem [resolvable:$false] %s2130_s30 }
  0x93   : > { %v1734_v54 = vpack.c.bf16 %v499_v53, %v498_v52  ;;  %v1738_v57 = vpack.c.bf16 %v501_v56, %v500_v55  ;;  %v482_v59 = vld [vmem:[#allocation8 + $0x58] sm:$0xff]  ;;  %v502_v61 = vld [vmem:[#allocation8 + $0xd0] sm:$0xff]  ;;  %v483_v0 = vld [vmem:[#allocation8 + $0x60] sm:$0xff]  ;;  %s2132_s9 = scalar_lea.vmem %s2131_s30, 1024  ;;  %p2133_p12 = scmp.lt.s32.totalorder %s2536_s20, %s2131_s30 }
  0x94   : > { %1765 = vmatpush3.bf16.msra.mxu1 %v1762_v23  ;;  %v1774_v60 = vpack.c.bf16 %v482_v59, %v481_v58  ;;  %v503_v62 = vld [vmem:[#allocation8 + $0xd8] sm:$0xff]  ;;  %v484_v1 = vld [vmem:[#allocation8 + $0x68] sm:$0xff]  ;;  %v504_v3 = vld [vmem:[#allocation8 + $0xe0] sm:$0xff]  ;;  %p2134_p1 = scmp.lt.s32.totalorder %s2132_s9, %s2126_s11 }
  0x95   : > { %1705 = vmatpush3.bf16.msra.mxu0 %v1702_v17  ;;  %1767 = vmatprep.subr.bf16.mxu1 %v1766_v29  ;;  %v1742_v63 = vpack.c.bf16 %v503_v62, %v502_v61  ;;  %v1778_v2 = vpack.c.bf16 %v484_v1, %v483_v0  ;;  %v505_v4 = vld [vmem:[#allocation8 + $0xe8] sm:$0xff]  ;;  %v485_v7 = vld [vmem:[#allocation8 + $0x70] sm:$0xff]  ;;  %v486_v8 = vld [vmem:[#allocation8 + $0x78] sm:$0xff] }
  0x96   : > { %1707 = vmatprep.subr.bf16.mxu0 %v1706_v24  ;;  %v1746_v5 = vpack.c.bf16 %v505_v4, %v504_v3  ;;  %v1782_v10 = vpack.c.bf16 %v486_v8, %v485_v7  ;;  %v506_v11 = vld [vmem:[#allocation8 + $0xf0] sm:$0xff]  ;;  %v507_v12 = vld [vmem:[#allocation8 + $0xf8] sm:$0xff]  ;;  %v683_v14 = vld [vmem:[#allocation8 + $0x100] sm:$0xff]  ;;  %p2135_p2 = por %p2134_p1, %p2133_p12 }
  0x97   : > { %v1750_v13 = vpack.c.bf16 %v507_v12, %v506_v11  ;;  %v684_v15 = vld [vmem:[#allocation8 + $0x108] sm:$0xff]  ;;  %v1274_v17 = vld [vmem:[%s2589_s2] ss:$0 sm:$0xff]  ;;  %v686_v31 = vld [vmem:[#allocation8 + $0x118] sm:$0xff] }
  0x98   : > { %1769 = vmatpush3.bf16.msra.mxu1 %v1766_v29  ;;  %v1786_v16 = vpack.c.bf16 %v684_v15, %v683_v14  ;;  %v687_v37 = vld [vmem:[#allocation8 + $0x120] sm:$0xff]  ;;  %v688_v38 = vld [vmem:[#allocation8 + $0x128] sm:$0xff]  ;;  %v689_v43 = vld [vmem:[#allocation8 + $0x130] sm:$0xff]  ;;  %p2136_p4 = pnand %p2135_p2, %p2129_p7 }
  0x99   : > { %1709 = vmatpush3.bf16.msra.mxu0 %v1706_v24  ;;  %1771 = vmatprep.subr.bf16.mxu1 %v1770_v35  ;;  %v1794_v41 = vpack.c.bf16 %v688_v38, %v687_v37  ;;  %v690_v44 = vld [vmem:[#allocation8 + $0x138] sm:$0xff]  ;;  %v691_v49 = vld [vmem:[#allocation8 + $0x140] sm:$0xff]  ;;  %v693_v53 = vld [vmem:[#allocation8 + $0x150] sm:$0xff] }
  0x9a   : > { %1711 = vmatprep.subr.bf16.mxu0 %v1710_v30  ;;  %v1798_v48 = vpack.c.bf16 %v690_v44, %v689_v43  ;;  %v695_v56 = vld [vmem:[#allocation8 + $0x160] sm:$0xff]  ;;  %v697_v59 = vld [vmem:[#allocation8 + $0x170] sm:$0xff]  ;;  %v800_v8 = vld [vmem:[#allocation8 + $0x1b8] sm:$0xff] }
  0x9b   : > { %v793_v62 = vld [vmem:[#allocation8 + $0x180] sm:$0xff]  ;;  %v795_v1 = vld [vmem:[#allocation8 + $0x190] sm:$0xff]  ;;  %v910_v38 = vld [vmem:[#allocation8 + $0x238] sm:$0xff] }
  0x9c   : > { %1773 = vmatpush3.bf16.msra.mxu1 %v1770_v35  ;;  %v797_v4 = vld [vmem:[#allocation8 + $0x1a0] sm:$0xff]  ;;  %v799_v7 = vld [vmem:[#allocation8 + $0x1b0] sm:$0xff] }
  0x9d   : > { %1713 = vmatpush3.bf16.msra.mxu0 %v1710_v30  ;;  %1775 = vmatprep.subr.bf16.mxu1 %v1774_v60  ;;  %v685_v30 = vld [vmem:[#allocation8 + $0x110] sm:$0xff]  ;;  %v1830_v11 = vpack.c.bf16 %v800_v8, %v799_v7  ;;  %v801_v12 = vld [vmem:[#allocation8 + $0x1c0] sm:$0xff] }
  0x9e   : > { %1715 = vmatprep.subr.bf16.mxu0 %v1714_v36  ;;  %v1790_v35 = vpack.c.bf16 %v686_v31, %v685_v30  ;;  %v803_v15 = vld [vmem:[#allocation8 + $0x1d0] sm:$0xff]  ;;  %v907_v31 = vld [vmem:[#allocation8 + $0x220] sm:$0xff] }
  0x9f   : > { %v909_v37 = vld [vmem:[#allocation8 + $0x230] sm:$0xff] }
  0xa0   : > { %1777 = vmatpush3.bf16.msra.mxu1 %v1774_v60  ;;  %v698_v60 = vld [vmem:[#allocation8 + $0x178] sm:$0xff]  ;;  %v913_v44 = vld [vmem:[#allocation8 + $0x250] sm:$0xff] }
  0xa1   : > { %1717 = vmatpush3.bf16.msra.mxu0 %v1714_v36  ;;  %1779 = vmatprep.subr.bf16.mxu1 %v1778_v2  ;;  %v1814_v61 = vpack.c.bf16 %v698_v60, %v697_v59  ;;  %v1026_v59 = vld [vmem:[#allocation9 + $0x18] sm:$0xff]  ;;  %v1033_v8 = vld [vmem:[#allocation9 + $0x50] sm:$0xff] }
  0xa2   : > { %1719 = vmatprep.subr.bf16.mxu0 %v1718_v39 }
  0xa4   : > { %1781 = vmatpush3.bf16.msra.mxu1 %v1778_v2  ;;  %v796_v2 = vld [vmem:[#allocation8 + $0x198] sm:$0xff] }
  0xa5   : > { %1721 = vmatpush3.bf16.msra.mxu0 %v1718_v39  ;;  %1783 = vmatprep.subr.bf16.mxu1 %v1782_v10  ;;  %v1822_v3 = vpack.c.bf16 %v796_v2, %v795_v1  ;;  %v1030_v1 = vld [vmem:[#allocation9 + $0x38] sm:$0xff] }
  0xa6   : > { %1723 = vmatprep.subr.bf16.mxu0 %v1722_v42 }
  0xa8   : > { %1457 = vmatmul.mubr.f32.vlgmr.msra.gmra.mrb[0].mxu0 %v2482_v45  ;;  %1785 = vmatpush3.bf16.msra.mxu1 %v1782_v10 }
  0xa9   : > { %1459 = vmatprep.mubr.f32.mxu0 %v2485_v46  ;;  %1725 = vmatpush3.bf16.msra.mxu0 %v1722_v42 }
  0xaa   : > { %1727 = vmatprep.subr.bf16.mxu0 %v1726_v47  ;;  %1787 = vmatprep.subr.bf16.mxu1 %v1786_v16 }
  0xac   : > { %1460 = vmatmul.mubr.f32.gmra.mrb[2].mxu0 %v2490_v50 }
  0xad   : > { %1729 = vmatpush3.bf16.msra.mxu0 %v1726_v47 }
  0xae   : > { %1731 = vmatprep.subr.bf16.mxu0 %v1730_v51 }
  0xb1   : > { %1733 = vmatpush3.bf16.msra.mxu0 %v1730_v51  ;;  %v692_v51 = vld [vmem:[#allocation8 + $0x148] sm:$0xff] }
  0xb2   : > { %1735 = vmatprep.subr.bf16.mxu0 %v1734_v54  ;;  %v1802_v52 = vpack.c.bf16 %v692_v51, %v691_v49  ;;  %v915_v49 = vld [vmem:[#allocation8 + $0x260] sm:$0xff]  ;;  %v916_v51 = vld [vmem:[#allocation8 + $0x268] sm:$0xff] }
  0xb5   : > { %1737 = vmatpush3.bf16.msra.mxu0 %v1734_v54  ;;  %v694_v54 = vld [vmem:[#allocation8 + $0x158] sm:$0xff] }
  0xb6   : > { %1739 = vmatprep.subr.bf16.mxu0 %v1738_v57  ;;  %v1806_v55 = vpack.c.bf16 %v694_v54, %v693_v53  ;;  %v917_v53 = vld [vmem:[#allocation8 + $0x270] sm:$0xff]  ;;  %v918_v54 = vld [vmem:[#allocation8 + $0x278] sm:$0xff] }
  0xb9   : > { %1741 = vmatpush3.bf16.msra.mxu0 %v1738_v57  ;;  %v696_v57 = vld [vmem:[#allocation8 + $0x168] sm:$0xff] }
  0xba   : > { %1743 = vmatprep.subr.bf16.mxu0 %v1742_v63  ;;  %v1810_v58 = vpack.c.bf16 %v696_v57, %v695_v56  ;;  %v1024_v56 = vld [vmem:[#allocation9 + $0x8] sm:$0xff]  ;;  %v1025_v57 = vld [vmem:[#allocation9 + $0x10] sm:$0xff] }
  0xbb   : > { %v1886_v60 = vpack.c.bf16 %v1026_v59, %v1025_v57 }
  0xbd   : > { %1745 = vmatpush3.bf16.msra.mxu0 %v1742_v63  ;;  %v794_v63 = vld [vmem:[#allocation8 + $0x188] sm:$0xff] }
  0xbe   : > { %1747 = vmatprep.subr.bf16.mxu0 %v1746_v5  ;;  %v1818_v0 = vpack.c.bf16 %v794_v63, %v793_v62  ;;  %v1028_v62 = vld [vmem:[#allocation9 + $0x28] sm:$0xff] }
  0xc1   : > { %1749 = vmatpush3.bf16.msra.mxu0 %v1746_v5  ;;  %v798_v5 = vld [vmem:[#allocation8 + $0x1a8] sm:$0xff] }
  0xc2   : > { %1751 = vmatprep.subr.bf16.mxu0 %v1750_v13  ;;  %v1826_v6 = vpack.c.bf16 %v798_v5, %v797_v4  ;;  %v1031_v4 = vld [vmem:[#allocation9 + $0x40] sm:$0xff]  ;;  %v1032_v5 = vld [vmem:[#allocation9 + $0x48] sm:$0xff] }
  0xc3   : > { %v1898_v7 = vpack.c.bf16 %v1032_v5, %v1031_v4 }
  0xc5   : > { %1753 = vmatpush3.bf16.msra.mxu0 %v1750_v13  ;;  %v802_v13 = vld [vmem:[#allocation8 + $0x1c8] sm:$0xff] }
  0xc6   : > { %v1834_v14 = vpack.c.bf16 %v802_v13, %v801_v12  ;;  %v1035_v12 = vld [vmem:[#allocation9 + $0x60] sm:$0xff]  ;;  %v1036_v13 = vld [vmem:[#allocation9 + $0x68] sm:$0xff] }
 0x17b   : > { %v1458_v18 = vpop.f32.mrb[0].mxu0 }
 0x17c   : > { %v2496_v19 = vadd.f32 %v1458_v18, %v1274_v17  ;;  %v436_v20 = vpop.f32.mrb[1].mxu0  ;;  %v805_v18 = vld [vmem:[#allocation8 + $0x1e0] sm:$0xff] }
 0x17d   : > { %v437_v21 = vadd.f32 %v1274_v17, %v436_v20 }
 0x17e   : > { %v456_v22 = vmax.f32 %v2496_v19, 0.0  ;;  %v806_v19 = vld [vmem:[#allocation8 + $0x1e8] sm:$0xff] }
 0x17f   : > { %v455_v23 = vmax.f32 %v437_v21, 0.0  ;;  %v1461_v24 = vpop.f32.mrb[2].mxu0  ;;  %v1842_v20 = vpack.c.bf16 %v806_v19, %v805_v18  ;;  %v807_v21 = vld [vmem:[#allocation8 + $0x1f0] sm:$0xff] }
 0x180   : > { %464 = vst [vmem:[#allocation2 + $0x10] sm:$0xff] %v456_v22  ;;  %v2501_v25 = vadd.f32 %v1461_v24, %v1274_v17  ;;  %v446_v26 = vpop.f32.mrb[3].mxu0  ;;  %v903_v24 = vld [vmem:[#allocation8 + $0x200] sm:$0xff] }
 0x181   : > { %463 = vst [vmem:[#allocation2 + $0x8] sm:$0xff] %v455_v23  ;;  %v2503_v27 = vadd.f32 %v1274_v17, %v446_v26 }
 0x182   : > { %v458_v28 = vmax.f32 %v2501_v25, 0.0  ;;  %v904_v25 = vld [vmem:[#allocation8 + $0x208] sm:$0xff] }
 0x183   : > { %v457_v29 = vmax.f32 %v2503_v27, 0.0  ;;  %v1850_v26 = vpack.c.bf16 %v904_v25, %v903_v24  ;;  %v905_v27 = vld [vmem:[#allocation8 + $0x210] sm:$0xff] }
 0x184   : > { %466 = vst [vmem:[#allocation2 + $0x30] sm:$0xff] %v458_v28 }
 0x185   : > { %465 = vst [vmem:[#allocation2 + $0x28] sm:$0xff] %v457_v29 }
 0x187   : > { %v789_v30 = vld [vmem:[#allocation2 + $0x12] sm:$0xff] }
 0x188   : > { %v487_v32 = vld [vmem:[#allocation2 + $0x6] sm:$0xff]  ;;  %v488_v34 = vld [vmem:[#allocation2 + $0xe] sm:$0xff] }
 0x189   : > { %v467_v33 = vld [vmem:[#allocation2 + $0x4] sm:$0xff]  ;;  %1494 = vmatprep.mubr.f32.mxu0 %v487_v32  ;;  %v2511_v36 = vld [vmem:[#allocation2 + $0xc] sm:$0xff]  ;;  %v899_v2 = vld [vmem:[#allocation2 + $0x14] sm:$0xff] }
 0x18a   : > { %1532 = vmatprep.mubr.f32.mxu1 %v467_v33  ;;  %1495 = vmatmul.mubr.f32.vlgmr.msra.gmra.mrb[4].mxu0 %v488_v34  ;;  %v788_v10 = vld [vmem:[#allocation2 + $0xa] sm:$0xff] }
 0x18b   : > { %1533 = vmatmul.mubr.f32.vlgmr.msra.gmra.mrb[0].mxu1 %v2511_v36  ;;  %v908_v32 = vld [vmem:[#allocation8 + $0x228] sm:$0xff] }
 0x18c   : > { %1789 = vmatpush3.bf16.msra.mxu1 %v1786_v16  ;;  %v469_v39 = vld [vmem:[#allocation2 + $0x24] sm:$0xff]  ;;  %v2514_v40 = vld [vmem:[#allocation2 + $0x2c] sm:$0xff]  ;;  %v804_v16 = vld [vmem:[#allocation8 + $0x1d8] sm:$0xff]  ;;  %v1858_v34 = vpack.c.bf16 %v908_v32, %v907_v31 }
 0x18d   : > { %1791 = vmatprep.subr.bf16.mxu1 %v1790_v35  ;;  %v489_v42 = vld [vmem:[#allocation2 + $0x26] sm:$0xff]  ;;  %1535 = vmatprep.mubr.f32.mxu1 %v469_v39  ;;  %v490_v47 = vld [vmem:[#allocation2 + $0x2e] sm:$0xff]  ;;  %v1838_v17 = vpack.c.bf16 %v804_v16, %v803_v15  ;;  %v1862_v39 = vpack.c.bf16 %v910_v38, %v909_v37  ;;  %v1038_v15 = vld [vmem:[#allocation9 + $0x78] sm:$0xff] }
 0x18e   : > { %1497 = vmatprep.mubr.f32.mxu0 %v489_v42  ;;  %v790_v33 = vld [vmem:[#allocation2 + $0x2a] sm:$0xff] }
 0x18f   : > { %1536 = vmatmul.mubr.f32.gmra.mrb[2].mxu1 %v2514_v40  ;;  %1498 = vmatmul.mubr.f32.gmra.mrb[6].mxu0 %v490_v47  ;;  %v912_v42 = vld [vmem:[#allocation8 + $0x248] sm:$0xff]  ;;  %v914_v47 = vld [vmem:[#allocation8 + $0x258] sm:$0xff] }
 0x190   : > { %1793 = vmatpush3.bf16.msra.mxu1 %v1790_v35  ;;  %1570 = vmatprep.mubr.f32.mxu1 %v455_v23  ;;  %v791_v35 = vld [vmem:[#allocation2 + $0x32] sm:$0xff] }
 0x191   : > { %1795 = vmatprep.subr.bf16.mxu1 %v1794_v41 }
 0x194   : > { %1797 = vmatpush3.bf16.msra.mxu1 %v1794_v41  ;;  %v911_v41 = vld [vmem:[#allocation8 + $0x240] sm:$0xff] }
 0x195   : > { %1799 = vmatprep.subr.bf16.mxu1 %v1798_v48  ;;  %v1866_v43 = vpack.c.bf16 %v912_v42, %v911_v41 }
 0x198   : > { %1801 = vmatpush3.bf16.msra.mxu1 %v1798_v48  ;;  %v1870_v48 = vpack.c.bf16 %v914_v47, %v913_v44 }
 0x199   : > { %1803 = vmatprep.subr.bf16.mxu1 %v1802_v52 }
 0x19c   : > { %1805 = vmatpush3.bf16.msra.mxu1 %v1802_v52  ;;  %v1874_v52 = vpack.c.bf16 %v916_v51, %v915_v49 }
 0x19d   : > { %1807 = vmatprep.subr.bf16.mxu1 %v1806_v55 }
 0x1a0   : > { %1809 = vmatpush3.bf16.msra.mxu1 %v1806_v55  ;;  %v1023_v55 = vld [vmem:[#allocation9] sm:$0xff] }
 0x1a1   : > { %1811 = vmatprep.subr.bf16.mxu1 %v1810_v58 }
 0x1a4   : > { %1813 = vmatpush3.bf16.msra.mxu1 %v1810_v58  ;;  %v1882_v58 = vpack.c.bf16 %v1024_v56, %v1023_v55 }
 0x1a5   : > { %1815 = vmatprep.subr.bf16.mxu1 %v1814_v61 }
 0x1a6   : > { %1883 = vmatprep.subr.bf16.mxu0 %v1882_v58 }
 0x1a7   : > { %1885 = vmatpush3.bf16.msra.mxu0 %v1882_v58 }
 0x1a8   : > { %1817 = vmatpush3.bf16.msra.mxu1 %v1814_v61  ;;  %v1027_v61 = vld [vmem:[#allocation9 + $0x20] sm:$0xff]  ;;  %1887 = vmatprep.subr.bf16.mxu0 %v1886_v60 }
 0x1a9   : > { %1819 = vmatprep.subr.bf16.mxu1 %v1818_v0  ;;  %v1890_v63 = vpack.c.bf16 %v1028_v62, %v1027_v61 }
 0x1ab   : > { %1571 = vmatmul.mubr.f32.vlgmr.msra.gmra.mrb[0].mxu1 %v456_v22  ;;  %v808_v22 = vld [vmem:[#allocation8 + $0x1f8] sm:$0xff]  ;;  %1889 = vmatpush3.bf16.msra.mxu0 %v1886_v60 }
 0x1ac   : > { %1573 = vmatprep.mubr.f32.mxu1 %v457_v29  ;;  %1821 = vmatpush3.bf16.msra.mxu1 %v1818_v0  ;;  %v1846_v23 = vpack.c.bf16 %v808_v22, %v807_v21  ;;  %v1029_v0 = vld [vmem:[#allocation9 + $0x30] sm:$0xff]  ;;  %v1275_v22 = vld [vmem:[%s2591_s4] ss:$0 sm:$0xff] }
 0x1ad   : > { %1823 = vmatprep.subr.bf16.mxu1 %v1822_v3  ;;  %1891 = vmatprep.subr.bf16.mxu0 %v1890_v63 }
 0x1af   : > { %1574 = vmatmul.mubr.f32.gmra.mrb[2].mxu1 %v458_v28  ;;  %v906_v28 = vld [vmem:[#allocation8 + $0x218] sm:$0xff]  ;;  %1893 = vmatpush3.bf16.msra.mxu0 %v1890_v63 }
 0x1b0   : > { %1825 = vmatpush3.bf16.msra.mxu1 %v1822_v3  ;;  %1608 = vmatprep.mubr.f32.mxu1 %v788_v10  ;;  %v1854_v29 = vpack.c.bf16 %v906_v28, %v905_v27  ;;  %v1894_v3 = vpack.c.bf16 %v1030_v1, %v1029_v0  ;;  %v1034_v10 = vld [vmem:[#allocation9 + $0x58] sm:$0xff] }
 0x1b1   : > { %1827 = vmatprep.subr.bf16.mxu1 %v1826_v6 }
 0x1b2   : > { %1895 = vmatprep.subr.bf16.mxu0 %v1894_v3 }
 0x1b3   : > { %1897 = vmatpush3.bf16.msra.mxu0 %v1894_v3 }
 0x1b4   : > { %1829 = vmatpush3.bf16.msra.mxu1 %v1826_v6  ;;  %v901_v6 = vld [vmem:[#allocation2 + $0x34] sm:$0xff]  ;;  %1899 = vmatprep.subr.bf16.mxu0 %v1898_v7 }
 0x1b5   : > { %1831 = vmatprep.subr.bf16.mxu1 %v1830_v11 }
 0x1b7   : > { %1901 = vmatpush3.bf16.msra.mxu0 %v1898_v7 }
 0x1b8   : > { %1833 = vmatpush3.bf16.msra.mxu1 %v1830_v11  ;;  %v1902_v11 = vpack.c.bf16 %v1034_v10, %v1033_v8 }
 0x1b9   : > { %1835 = vmatprep.subr.bf16.mxu1 %v1834_v14 }
 0x1ba   : > { %1903 = vmatprep.subr.bf16.mxu0 %v1902_v11 }
 0x1bb   : > { %1905 = vmatpush3.bf16.msra.mxu0 %v1902_v11 }
 0x1bc   : > { %1837 = vmatpush3.bf16.msra.mxu1 %v1834_v14  ;;  %v1037_v14 = vld [vmem:[#allocation9 + $0x70] sm:$0xff] }
 0x1bd   : > { %1839 = vmatprep.subr.bf16.mxu1 %v1838_v17  ;;  %v1910_v16 = vpack.c.bf16 %v1038_v15, %v1037_v14 }
 0x1c0   : > { %1841 = vmatpush3.bf16.msra.mxu1 %v1838_v17 }
 0x1c1   : > { %1843 = vmatprep.subr.bf16.mxu1 %v1842_v20 }
 0x1c4   : > { %1845 = vmatpush3.bf16.msra.mxu1 %v1842_v20 }
 0x1c5   : > { %1847 = vmatprep.subr.bf16.mxu1 %v1846_v23 }
 0x1c8   : > { %1849 = vmatpush3.bf16.msra.mxu1 %v1846_v23 }
 0x1c9   : > { %1851 = vmatprep.subr.bf16.mxu1 %v1850_v26 }
 0x1cb   : > { %1609 = vmatmul.mubr.f32.vlgmr.msra.gmra.mrb[0].mxu1 %v789_v30 }
 0x1cc   : > { %1611 = vmatprep.mubr.f32.mxu1 %v790_v33  ;;  %1853 = vmatpush3.bf16.msra.mxu1 %v1850_v26 }
 0x1cd   : > { %1855 = vmatprep.subr.bf16.mxu1 %v1854_v29 }
 0x1cf   : > { %1612 = vmatmul.mubr.f32.gmra.mrb[2].mxu1 %v791_v35 }
 0x1d0   : > { %1857 = vmatpush3.bf16.msra.mxu1 %v1854_v29  ;;  %1646 = vmatprep.mubr.f32.mxu1 %v2511_v36  ;;  %v1878_v36 = vpack.c.bf16 %v918_v54, %v917_v53 }
 0x1d1   : > { %1859 = vmatprep.subr.bf16.mxu1 %v1858_v34 }
 0x1d4   : > { %1861 = vmatpush3.bf16.msra.mxu1 %v1858_v34 }
 0x1d5   : > { %1863 = vmatprep.subr.bf16.mxu1 %v1862_v39 }
 0x1d8   : > { %1865 = vmatpush3.bf16.msra.mxu1 %v1862_v39  ;;  %v1276_v39 = vld [vmem:[%s2593_s6] ss:$0 sm:$0xff] }
 0x1d9   : > { %1867 = vmatprep.subr.bf16.mxu1 %v1866_v43 }
 0x1dc   : > { %1869 = vmatpush3.bf16.msra.mxu1 %v1866_v43 }
 0x1dd   : > { %1871 = vmatprep.subr.bf16.mxu1 %v1870_v48 }
 0x1e0   : > { %1873 = vmatpush3.bf16.msra.mxu1 %v1870_v48 }
 0x1e1   : > { %1875 = vmatprep.subr.bf16.mxu1 %v1874_v52 }
 0x1e4   : > { %1877 = vmatpush3.bf16.msra.mxu1 %v1874_v52 }
 0x1e5   : > { %1879 = vmatprep.subr.bf16.mxu1 %v1878_v36 }
 0x1e8   : > { %1881 = vmatpush3.bf16.msra.mxu1 %v1878_v36 }
 0x1eb   : > { %1647 = vmatmul.mubr.f32.vlgmr.msra.gmra.mrb[0].mxu1 %v899_v2 }
 0x1ec   : > { %1649 = vmatprep.mubr.f32.mxu1 %v2514_v40  ;;  %v1906_v40 = vpack.c.bf16 %v1036_v13, %v1035_v12 }
 0x1ee   : > { %1907 = vmatprep.subr.bf16.mxu0 %v1906_v40 }
 0x1ef   : > { %1650 = vmatmul.mubr.f32.gmra.mrb[2].mxu1 %v901_v6  ;;  %1909 = vmatpush3.bf16.msra.mxu0 %v1906_v40 }
 0x1f0   : > { %1911 = vmatprep.subr.bf16.mxu0 %v1910_v16 }
 0x1f3   : > { %1913 = vmatpush3.bf16.msra.mxu0 %v1910_v16 }
 0x25d   : > { %v1496_v17 = vpop.f32.mrb[4].mxu0 }
 0x25e   : > { %v574_v18 = vpop.f32.mrb[5].mxu0 }
 0x262   : > { %v1499_v19 = vpop.f32.mrb[6].mxu0 }
 0x263   : > { %v584_v20 = vpop.f32.mrb[7].mxu0 }
 0x2be   : > { %v1648_v21 = vpop.f32.mrb[0].mxu1 }
 0x2bf   : > { %v1914_v23 = vadd.f32 %v1648_v21, %v1496_v17  ;;  %v985_v24 = vpop.f32.mrb[1].mxu1 }
 0x2c0   : > { %v1915_v25 = vadd.f32 %v985_v24, %v574_v18 }
 0x2c1   : > { %v1016_v26 = vadd.f32 %v1914_v23, %v1275_v22 }
 0x2c2   : > { %v1015_v27 = vadd.f32 %v1915_v25, %v1275_v22  ;;  %v1651_v28 = vpop.f32.mrb[2].mxu1 }
 0x2c3   : > { %v1916_v29 = vadd.f32 %v1651_v28, %v1499_v19  ;;  %v995_v30 = vpop.f32.mrb[3].mxu1  ;;  %v1020_v33 = vmax.f32 %v1016_v26, 0.0 }
 0x2c4   : > { %v1019_v31 = vmax.f32 %v1015_v27, 0.0  ;;  %v1917_v32 = vadd.f32 %v995_v30, %v584_v20 }
 0x2c5   : > { %v1018_v34 = vadd.f32 %v1916_v29, %v1275_v22 }
 0x2c6   : > { %v1017_v35 = vadd.f32 %v1917_v32, %v1275_v22  ;;  %1684 = vmatprep.mubr.f32.mxu0 %v1019_v31 }
 0x2c7   : > { %1685 = vmatmul.mubr.f32.vlgmr.msra.gmra.mrb[8].mxu0 %v1020_v33  ;;  %v1022_v38 = vmax.f32 %v1018_v34, 0.0 }
 0x2c8   : > { %v1021_v37 = vmax.f32 %v1017_v35, 0.0 }
 0x2ca   : > { %1687 = vmatprep.mubr.f32.mxu0 %v1021_v37 }
 0x2cb   : > { %1688 = vmatmul.mubr.f32.gmra.mrb[10].mxu0 %v1022_v38 }
 0x39a   : > { %v1686_v41 = vpop.f32.mrb[8].mxu0 }
 0x39b   : > { %v1118_v42 = vadd.f32 %v1686_v41, %v1276_v39  ;;  %v1112_v43 = vpop.f32.mrb[9].mxu0 }
 0x39c   : > { %v1113_v44 = vadd.f32 %v1276_v39, %v1112_v43 }
 0x39d   : > { %v1132_v47 = vmax.f32 %v1118_v42, 0.0 }
 0x39e   : > { %v1131_v48 = vmax.f32 %v1113_v44, 0.0  ;;  %v1689_v49 = vpop.f32.mrb[10].mxu0 }
 0x39f   : > { %v1136_v51 = vadd.f32 %v1132_v47, %v2482_v45  ;;  %v1128_v52 = vadd.f32 %v1689_v49, %v1276_v39  ;;  %v1122_v53 = vpop.f32.mrb[11].mxu0 }
 0x3a0   : > { %v1135_v54 = vadd.f32 %v1131_v48, %v2478_v9  ;;  %v1123_v36 = vadd.f32 %v1276_v39, %v1122_v53 }
 0x3a1   : > { %1140 = vst [vmem:[%s340_s12 + $0x8] sm:$0xff] %v1136_v51  ;;  %v1134_v55 = vmax.f32 %v1128_v52, 0.0 }
 0x3a2   : > { %1139 = vst [vmem:[%s340_s12] sm:$0xff] %v1135_v54  ;;  %v1133_v45 = vmax.f32 %v1123_v36, 0.0 }
 0x3a3   : > { %v1138_v56 = vadd.f32 %v1134_v55, %v2490_v50 }
 0x3a4   : > { %v1137_v9 = vadd.f32 %v1133_v45, %v2485_v46 }
 0x3a5   : > { %1142 = vst [vmem:[%s340_s12 + $0x18] sm:$0xff] %v1138_v56 }
 0x3a6   : > { %1141 = vst [vmem:[%s340_s12 + $0x10] sm:$0xff] %v1137_v9 }
 0x3a7   : > { %2139 = shalt.err (!%p2136_p4)
}
 0x3a8   : > { %s2140_s13 = scalar_lea.hbm %s2542_s23, 512  ;;  %s2144_s14 = scalar_lea.hbm %s2594_s7, 1024 }
 0x3a9   : > { %p2141_p9 = scmp.ne.s32.totalorder %s2542_s23, %s2140_s13  ;;  %p2145_p8 = scmp.lt.u32.totalorder %s2542_s23, %s2594_s7 }
 0x3aa   : > { %p2146_p13 = scmp.lt.u32.totalorder %s2144_s14, %s2140_s13  ;;  %p2148_p10 = scmp.lt.u32.totalorder %s2140_s13, %s2542_s23 }
 0x3ab   : > { %p2142_p0 = pnand %p2141_p9, %p2406_p5 }
 0x3ac   : > { %p2147_p6 = por %p2146_p13, %p2145_p8 }
 0x3ad   : > { %p2143_p11 = pneg %p2142_p0 }
 0x3ae   : > { %p2149_p3 = por %p2148_p10, %p2147_p6 }
 0x3b0   : > { %p2150_p7 = pnand %p2149_p3, %p2143_p11 }
 0x3b2   : > { %2153 = shalt.err (!%p2150_p7)
}
 0x3b3   : > { %s2210_s16 = smov 128   ;;  %s2211_s29 = smov 8  }
 0x3b4   : > { %1944 = dma.vmem_to_hbm [thread:$0]  (%p2406_p5), %s2536_s20, 512, %s2542_s23, %s1144_s28, %s2210_s16, %s2210_s16, %s2211_s29  }
 0x3b5 PF: > { %s2614_s11 = sld [smem:[#allocation16_spill]]  ;;  %s1172_s8 = sand.u32 1, %s2188_s24  }
 0x3b6   : > { %p2616_p1 = scmp.ge.s32.totalorder %s2200_s27, 2  ;;  %s1173_s30 = scalar_lea.sflag [#allocation5], %s1172_s8 }
 0x3bb   : > { %p2615_p12 = scmp.ne.s32.totalorder %s2614_s11, 0 }
 0x3bd   : > { %p1961_p2 = pnand %p2616_p1, %p2615_p12 }
 0x3bf   : > { %2183 = dma.done.wait (!%p1961_p2), %s1173_s30, 512  }
 0x3c0   : > { %2185 = vsyncadd (!%p1961_p2), %s1173_s30, 4294966784  ;;  %p22_p4 = scmp.ge.s32.totalorder %s2392_s22, 4   ;;  %s2617_s24 = smov %s2192_s25 }
 0x3c1   : > { %s2618_s25 = smov %s2196_s26  ;;  %s2619_s26 = smov %s2402_s18 }
 0x3c2   : > { %s2620_s27 = smov %s2392_s22  ;;  %24 = sbr.rel (!%p22_p4) target bundleno = 7 (0x7), region = 109 }
 0x3c9   :  { %1178 = vsyncpa [#allocation4], 1 }
 0x3ca   :  { %1180 = vsyncpa [#allocation4 + $0x1], 1 }
 0x3cb   :  { %1181 = vsyncpa [#allocation7], 1 }
 0x3cc   :  { %1182 = vsyncpa [#allocation10], 1 }
 0x3cd   :  { %1183 = vsyncpa [#allocation5], 1 }
 0x3ce   :  { %1185 = vsyncpa [#allocation5 + $0x1], 1 }

</bundles_post_ra>
